<compile_context>
chip_gen: v7x
topology: tpu7x:2x2x1
jax: 0.10.0
libtpu: 0.0.40
codegen_flags: <defaults>
</compile_context>

<pallas_src>
from functools import partial

import jax
import jax.numpy as jnp
from jax.experimental import pallas as pl
from jax.experimental.pallas import tpu as pltpu

IMG_EMB = 294
HM_EMB = 294
FC1_IN = IMG_EMB + HM_EMB  # 588, matches nn.Linear(588, num_classes)

MAX_BATCH_TILE = 512  # rows per grid step for large batches


def _round_up(x, m):
    return ((x + m - 1) // m) * m


# ----------------------------------------------------------------------------
# Fused Pallas kernel:  out = x @ Wx_fused + y @ Wy_fused + b_fused
# (fc1 folded through the linear embedders; all intermediates stay in vregs)
# ----------------------------------------------------------------------------
def _fused_combine_kernel(x_ref, y_ref, wx_ref, wy_ref, b_ref, o_ref):
    out = jnp.dot(x_ref[...], wx_ref[...], preferred_element_type=jnp.float32)
    out = out + jnp.dot(y_ref[...], wy_ref[...],
                        preferred_element_type=jnp.float32)
    o_ref[...] = (out + b_ref[...]).astype(o_ref.dtype)


def pallas_fused_combine(x_flat, y_flat, p, tb):
    """x_flat: [Bp, Kx] bf16, y_flat: [Bp, Ky] bf16 -> [Bp, Np] f32."""
    Bp, Kx = x_flat.shape
    _, Ky = y_flat.shape
    Np = p["w_x_fused"].shape[1]   # padded num_classes (128)
    grid = (Bp // tb,)

    return pl.pallas_call(
        _fused_combine_kernel,
        out_shape=jax.ShapeDtypeStruct((Bp, Np), jnp.float32),
        grid=grid,
        in_specs=[
            pl.BlockSpec((tb, Kx), lambda i: (i, 0)),
            pl.BlockSpec((tb, Ky), lambda i: (i, 0)),
            pl.BlockSpec((Kx, Np), lambda i: (0, 0)),
            pl.BlockSpec((Ky, Np), lambda i: (0, 0)),
            pl.BlockSpec((1, Np), lambda i: (0, 0)),
        ],
        out_specs=pl.BlockSpec((tb, Np), lambda i: (i, 0)),
        compiler_params=pltpu.CompilerParams(
            dimension_semantics=("parallel",)),
    )(x_flat, y_flat, p["w_x_fused"], p["w_y_fused"], p["b_fused"])


# ----------------------------------------------------------------------------
# Parameters
# ----------------------------------------------------------------------------
def init_raw_params(num_classes, x_shape, y_shape, key):
    """Unpadded, PyTorch-layout-equivalent parameters (for reference math)."""
    kx, ky, kf, kb = jax.random.split(key, 4)
    x_feat = x_shape[1] * x_shape[2] * x_shape[3]
    y_feat = y_shape[1] * y_shape[2] * y_shape[3]
    scale = 0.02
    return {
        # stand-in extendNet / heatmapNet embedding projections
        "w_img": scale * jax.random.normal(kx, (x_feat, IMG_EMB), jnp.float32),
        "b_img": jnp.zeros((IMG_EMB,), jnp.float32),
        "w_hm": scale * jax.random.normal(ky, (y_feat, HM_EMB), jnp.float32),
        "b_hm": jnp.zeros((HM_EMB,), jnp.float32),
        # fc1: nn.Linear(588, num_classes)  (stored as [588, num_classes])
        "w_fc1": scale * jax.random.normal(kf, (FC1_IN, num_classes),
                                           jnp.float32),
        "b_fc1": scale * jax.random.normal(kb, (num_classes,), jnp.float32),
    }


def prepare_params(raw):
    """Fold fc1 through the (linear) embedders, pad lanes, cast to bf16.

    cat([x@Wimg+bimg, y@Whm+bhm]) @ Wfc1 + bfc1
      == x @ (Wimg @ W1) + y @ (Whm @ W2) + (bimg @ W1 + bhm @ W2 + bfc1)
    with W1 = Wfc1[:294], W2 = Wfc1[294:].  Exact in f32; done once at init.
    """
    num_classes = raw["w_fc1"].shape[1]
    Kx = raw["w_img"].shape[0]
    Ky = raw["w_hm"].shape[0]
    npad = _round_up(num_classes, 128)

    w1 = raw["w_fc1"][:IMG_EMB, :]     # [294, C]
    w2 = raw["w_fc1"][IMG_EMB:, :]     # [294, C]

    wx = raw["w_img"] @ w1             # [Kx, C]   (f32 fold)
    wy = raw["w_hm"] @ w2              # [Ky, C]
    bf = raw["b_img"] @ w1 + raw["b_hm"] @ w2 + raw["b_fc1"]   # [C]

    # zero-pad the class lane dim to 128 (keeps math exact), cast weights bf16
    w_x_fused = jnp.zeros((Kx, npad), jnp.float32).at[:, :num_classes].set(wx)
    w_y_fused = jnp.zeros((Ky, npad), jnp.float32).at[:, :num_classes].set(wy)
    b_fused = jnp.zeros((1, npad), jnp.float32).at[:, :num_classes].set(
        bf[None, :])

    return {
        "w_x_fused": w_x_fused.astype(jnp.bfloat16),
        "w_y_fused": w_y_fused.astype(jnp.bfloat16),
        "b_fused": b_fused,            # bias stays f32 (added post-accum)
    }


# ----------------------------------------------------------------------------
# Forward
# ----------------------------------------------------------------------------
def _choose_batch_tiling(B):
    """Static (trace-time) choice of padded batch and tile size."""
    if B <= MAX_BATCH_TILE:
        return B, B                    # single full-array block, no pad
    bp = _round_up(B, MAX_BATCH_TILE)
    return bp, MAX_BATCH_TILE


@partial(jax.jit, static_argnames=("num_classes",))
def combine_net_forward(params, x, y, *, num_classes):
    B = x.shape[0]
    # glue: NCHW flatten (plain JAX), bf16 storage for the mem-bound kernel
    x_flat = x.reshape(B, -1).astype(jnp.bfloat16)
    y_flat = y.reshape(B, -1).astype(jnp.bfloat16)

    b_pad, tb = _choose_batch_tiling(B)
    if b_pad != B:
        x_flat = jnp.pad(x_flat, ((0, b_pad - B), (0, 0)))
        y_flat = jnp.pad(y_flat, ((0, b_pad - B), (0, 0)))

    # dense_drop / fc1_drop are identity in eval mode.
    out_pad = pallas_fused_combine(x_flat, y_flat, params, tb)
    return out_pad[:B, :num_classes]


def _reference_forward(raw, x, y):
    """Pure-JAX f32 reference of the original two-stage math."""
    B = x.shape[0]
    e_img = x.reshape(B, -1) @ raw["w_img"] + raw["b_img"]
    e_hm = y.reshape(B, -1) @ raw["w_hm"] + raw["b_hm"]
    return jnp.concatenate([e_img, e_hm], axis=1) @ raw["w_fc1"] + raw["b_fc1"]


if __name__ == "__main__":
    num_classes = 7
    key = jax.random.PRNGKey(0)
    kx, ky, kp, kx2, ky2 = jax.random.split(key, 5)

    # ---- small serving-style batch (single full-array block path) ----
    B = 2
    x_shape = (B, 3, 16, 16)   # image input   (NCHW) -> 768 features
    y_shape = (B, 1, 16, 16)   # heatmap input (NCHW) -> 256 features
    x = jax.random.normal(kx, x_shape, jnp.float32)
    y = jax.random.normal(ky, y_shape, jnp.float32)

    raw = init_raw_params(num_classes, x_shape, y_shape, kp)
    params = prepare_params(raw)

    out = combine_net_forward(params, x, y, num_classes=num_classes)
    out = jax.block_until_ready(out)
    assert out.shape == (B, num_classes), out.shape

    # f32 reference; bf16 storage (f32 accumulation) => loose tolerance
    ref = _reference_forward(raw, x, y)
    assert jnp.allclose(out, ref, atol=5e-2, rtol=5e-2), (
        float(jnp.max(jnp.abs(out - ref))))

    # ---- larger batch (tiled / padded grid path) ----
    B2 = 600
    x2 = jax.random.normal(kx2, (B2, 3, 16, 16), jnp.float32)
    y2 = jax.random.normal(ky2, (B2, 1, 16, 16), jnp.float32)
    out2 = combine_net_forward(params, x2, y2, num_classes=num_classes)
    out2 = jax.block_until_ready(out2)
    assert out2.shape == (B2, num_classes), out2.shape
    ref2 = _reference_forward(raw, x2, y2)
    assert jnp.allclose(out2, ref2, atol=5e-2, rtol=5e-2), (
        float(jnp.max(jnp.abs(out2 - ref2))))

    print("KERNEL_OK")
</pallas_src>

<mosaic_0001>
module attributes {stable_mosaic.version = 11 : i64} {
  func.func @_fused_combine_kernel(%arg0: i32, %arg1: memref<2x768xbf16, #tpu.memory_space<vmem>>, %arg2: memref<2x256xbf16, #tpu.memory_space<vmem>>, %arg3: memref<768x128xbf16, #tpu.memory_space<vmem>>, %arg4: memref<256x128xbf16, #tpu.memory_space<vmem>>, %arg5: memref<1x128xf32, #tpu.memory_space<vmem>>, %arg6: memref<2x128xf32, #tpu.memory_space<vmem>>) attributes {dimension_semantics = [#tpu.dimension_semantics<parallel>], iteration_bounds = array<i64: 1>, scalar_prefetch = 0 : i64, scratch_operands = 0 : i64, tpu.core_type = #tpu.core_type<tc>, window_params = [{transform_indices = @transform_0, window_bounds = array<i64: 2, 768>}, {transform_indices = @transform_1, window_bounds = array<i64: 2, 256>}, {pipeline_mode = #tpu.pipeline_mode<synchronous>, transform_indices = @transform_2, window_bounds = array<i64: 768, 128>}, {pipeline_mode = #tpu.pipeline_mode<synchronous>, transform_indices = @transform_3, window_bounds = array<i64: 256, 128>}, {pipeline_mode = #tpu.pipeline_mode<synchronous>, transform_indices = @transform_4, window_bounds = array<i64: 1, 128>}, {transform_indices = @transform_5, window_bounds = array<i64: 2, 128>}]} {
    %c0 = arith.constant 0 : index
    %c0_0 = arith.constant 0 : index
    %0 = vector.load %arg1[%c0, %c0_0] : memref<2x768xbf16, #tpu.memory_space<vmem>>, vector<2x768xbf16>
    %c0_1 = arith.constant 0 : index
    %c0_2 = arith.constant 0 : index
    %1 = vector.load %arg3[%c0_1, %c0_2] : memref<768x128xbf16, #tpu.memory_space<vmem>>, vector<768x128xbf16>
    %cst = arith.constant dense<0.000000e+00> : vector<2x128xf32>
    %2 = tpu.matmul %0, %1, %cst {dimension_numbers = #tpu.dot_dimension_numbers<[1], [0], [0], [1], [0, 0, 1, 1], [], []>} : vector<2x768xbf16>, vector<768x128xbf16>, vector<2x128xf32> -> vector<2x128xf32>
    %c0_3 = arith.constant 0 : index
    %c0_4 = arith.constant 0 : index
    %3 = vector.load %arg2[%c0_3, %c0_4] : memref<2x256xbf16, #tpu.memory_space<vmem>>, vector<2x256xbf16>
    %c0_5 = arith.constant 0 : index
    %c0_6 = arith.constant 0 : index
    %4 = vector.load %arg4[%c0_5, %c0_6] : memref<256x128xbf16, #tpu.memory_space<vmem>>, vector<256x128xbf16>
    %cst_7 = arith.constant dense<0.000000e+00> : vector<2x128xf32>
    %5 = tpu.matmul %3, %4, %cst_7 {dimension_numbers = #tpu.dot_dimension_numbers<[1], [0], [0], [1], [0, 0, 1, 1], [], []>} : vector<2x256xbf16>, vector<256x128xbf16>, vector<2x128xf32> -> vector<2x128xf32>
    %6 = arith.addf %2, %5 : vector<2x128xf32>
    %c0_8 = arith.constant 0 : index
    %c0_9 = arith.constant 0 : index
    %7 = vector.load %arg5[%c0_8, %c0_9] : memref<1x128xf32, #tpu.memory_space<vmem>>, vector<1x128xf32>
    %8 = vector.broadcast %7 : vector<1x128xf32> to vector<2x128xf32>
    %9 = arith.addf %6, %8 : vector<2x128xf32>
    %c0_10 = arith.constant 0 : index
    %c0_11 = arith.constant 0 : index
    %10 = vector.load %arg6[%c0_10, %c0_11] : memref<2x128xf32, #tpu.memory_space<vmem>>, vector<2x128xf32>
    tpu.vector_store %arg6[%c0_10, %c0_11], %9 {strides = array<i32>} : memref<2x128xf32, #tpu.memory_space<vmem>>, vector<2x128xf32>,
    return
  }
  func.func @transform_0(%arg0: i32) -> (i32, i32) {
    %c0_i32 = arith.constant 0 : i32
    %c0_i32_0 = arith.constant 0 : i32
    return %arg0, %c0_i32 : i32, i32
  }
  func.func @transform_1(%arg0: i32) -> (i32, i32) {
    %c0_i32 = arith.constant 0 : i32
    %c0_i32_0 = arith.constant 0 : i32
    return %arg0, %c0_i32 : i32, i32
  }
  func.func @transform_2(%arg0: i32) -> (i32, i32) {
    %c0_i32 = arith.constant 0 : i32
    %c0_i32_0 = arith.constant 0 : i32
    %c0_i32_1 = arith.constant 0 : i32
    return %c0_i32, %c0_i32_0 : i32, i32
  }
  func.func @transform_3(%arg0: i32) -> (i32, i32) {
    %c0_i32 = arith.constant 0 : i32
    %c0_i32_0 = arith.constant 0 : i32
    %c0_i32_1 = arith.constant 0 : i32
    return %c0_i32, %c0_i32_0 : i32, i32
  }
  func.func @transform_4(%arg0: i32) -> (i32, i32) {
    %c0_i32 = arith.constant 0 : i32
    %c0_i32_0 = arith.constant 0 : i32
    %c0_i32_1 = arith.constant 0 : i32
    return %c0_i32, %c0_i32_0 : i32, i32
  }
  func.func @transform_5(%arg0: i32) -> (i32, i32) {
    %c0_i32 = arith.constant 0 : i32
    %c0_i32_0 = arith.constant 0 : i32
    return %arg0, %c0_i32 : i32, i32
  }
}

</mosaic_0001>

<bundles_post_ra>
// kernel: combine_net_forward.1
= control target key start
LH: loop header
LB: loop body
LE: loop exit
PB: predicated region body
PF: predicated region fallthrough
CT: control target
= control target key end

     0   :  { %10 = vsyncpa [#allocation3], 0  ;;  %s1221_s0 = inlined_call_operand.vmem [shape: bf16[2,768], index: 0, kind: input, shape index: {}]   ;;  %s1222_s1 = inlined_call_operand.vmem [shape: bf16[2,256], index: 1, kind: input, shape index: {}]   ;;  %s1223_s2 = inlined_call_operand.hbm [shape: bf16[768,128], index: 2, kind: input, shape index: {}]   ;;  %s1224_s3 = inlined_call_operand.vmem [shape: bf16[256,128], index: 3, kind: input, shape index: {}]   ;;  %s1225_s4 = inlined_call_operand.vmem [shape: f32[1,128], index: 4, kind: input, shape index: {}]   ;;  %s1226_s5 = inlined_call_operand.hbm [shape: f32[2,128], index: 5, kind: output, shape index: {}]  }
   0x1   :  { %11 = vsyncpa [#allocation4], 0  ;;  %s1085_s18 = smov [#allocation2]   ;;  %s1037_s22 = scalar_lea.hbm %s1223_s2, 6144 }
   0x2   :  { %s21_s19 = sshll.u32 %s1085_s18, 4  ;;  %p1038_p0 = scmp.ne.s32.totalorder %s1223_s2, %s1037_s22  ;;  %s22_s19 = int_to_ptr.vmem [resolvable:$true] %s21_s19 }
   0x3   :  { %p1041_p1 = scmp.lt.u32.totalorder %s1037_s22, %s1223_s2 }
   0x5   :  { %p1043_p2 = pnand %p1041_p1, %p1038_p0 }
   0x7   :  { %1046 = shalt.err (!%p1043_p2)
}
   0x8   :  { %s1047_s27 = scalar_lea.vmem %s22_s19, 6144  ;;  %p1052_p4 = scmp.lt.s32.totalorder %s22_s19, %s22_s19 }
   0x9   :  { %p1048_p3 = scmp.ne.s32.totalorder %s22_s19, %s1047_s27  ;;  %p1053_p5 = scmp.lt.s32.totalorder %s1047_s27, %s1047_s27 }
   0xb   :  { %p1054_p6 = por %p1053_p5, %p1052_p4 }
   0xd   :  { %p1055_p7 = pnand %p1054_p6, %p1048_p3 }
   0xf   :  { %1058 = shalt.err (!%p1055_p7)
}
  0x10   :  { %s1086_s28 = smov 64   ;;  %s1087_s29 = smov 4  }
  0x11   :  { %27 = dma.hbm_to_vmem [thread:$0]  %s1223_s2, 6144, %s22_s19, [#allocation3], %s1086_s28, %s1086_s28, %s1087_s29  }
  0x12   :  { %1081 = dma.done.wait [#allocation3], 6144  }
  0x13   :  { %1082 = vsyncadd [#allocation3], 4294961152  ;;  %v972_v0 = vld [vmem:[%s1224_s3 + $0x40] sm:$0xff]   ;;  %v976_v4 = vld [vmem:[%s1224_s3 + $0x48] sm:$0xff]   ;;  %v1088_v22 = vmov 1966171168   ;;  %v178_v24 = vlaneseq }
  0x14   :  { %v973_v1 = vld [vmem:[#allocation2 + $0x40] sm:$0xff]   ;;  %879 = vmatprep.subr.bf16.mxu0 %v972_v0  ;;  %v977_v5 = vld [vmem:[#allocation2 + $0x48] sm:$0xff]   ;;  %v980_v8 = vld [vmem:[%s1224_s3 + $0x50] sm:$0xff]   ;;  %v176_v23 = vunpack.c.l.s4 %v1088_v22 }
  0x15   :  { %v974_v2 = vld [vmem:[%s1224_s3] sm:$0xff]   ;;  %901 = vmatprep.subr.bf16.mxu1 %v973_v1  ;;  %v978_v6 = vld [vmem:[%s1224_s3 + $0x8] sm:$0xff]   ;;  %v981_v9 = vld [vmem:[#allocation2 + $0x50] sm:$0xff]   ;;  %v179_v30 = vshrl.u32 %v178_v24, 7 }
  0x16   :  { %v975_v3 = vld [vmem:[#allocation2] sm:$0xff]   ;;  %880 = vmatpush3.bf16.msra.mxu0 %v974_v2  ;;  %v979_v7 = vld [vmem:[#allocation2 + $0x8] sm:$0xff]   ;;  %v982_v10 = vld [vmem:[%s1224_s3 + $0x10] sm:$0xff]   ;;  %v177_v29 = vunpack.c.0.s8 %v176_v23 }
  0x17   :  { %902 = vmatpush3.bf16.msra.mxu1 %v975_v3  ;;  %881 = vmatprep.subr.bf16.mxu0 %v976_v4  ;;  %v983_v11 = vld [vmem:[#allocation2 + $0x10] sm:$0xff]   ;;  %v984_v12 = vld [vmem:[%s1224_s3 + $0x58] sm:$0xff]   ;;  %v988_v16 = vld [vmem:[%s1224_s3 + $0x60] sm:$0xff]  }
  0x18   :  { %903 = vmatprep.subr.bf16.mxu1 %v977_v5  ;;  %v985_v13 = vld [vmem:[#allocation2 + $0x58] sm:$0xff]   ;;  %v989_v17 = vld [vmem:[#allocation2 + $0x60] sm:$0xff]   ;;  %v992_v20 = vld [vmem:[%s1224_s3 + $0x68] sm:$0xff]   ;;  %v1177_v35 = vsub.s32 %v177_v29, %v179_v30 }
  0x19   :  { %v986_v14 = vld [vmem:[%s1224_s3 + $0x18] sm:$0xff]   ;;  %v990_v18 = vld [vmem:[%s1224_s3 + $0x20] sm:$0xff]   ;;  %v993_v21 = vld [vmem:[#allocation2 + $0x68] sm:$0xff]  }
  0x1a   :  { %882 = vmatpush3.bf16.msra.mxu0 %v978_v6  ;;  %v987_v15 = vld [vmem:[#allocation2 + $0x18] sm:$0xff]   ;;  %v991_v19 = vld [vmem:[#allocation2 + $0x20] sm:$0xff]   ;;  %v994_v25 = vld [vmem:[%s1224_s3 + $0x28] sm:$0xff]  }
  0x1b   :  { %904 = vmatpush3.bf16.msra.mxu1 %v979_v7  ;;  %883 = vmatprep.subr.bf16.mxu0 %v980_v8  ;;  %v995_v26 = vld [vmem:[#allocation2 + $0x28] sm:$0xff]   ;;  %v996_v27 = vld [vmem:[%s1224_s3 + $0x70] sm:$0xff]   ;;  %v1000_v33 = vld [vmem:[%s1224_s3 + $0x78] sm:$0xff]  }
  0x1c   :  { %905 = vmatprep.subr.bf16.mxu1 %v981_v9  ;;  %v997_v28 = vld [vmem:[#allocation2 + $0x70] sm:$0xff]   ;;  %v1001_v34 = vld [vmem:[#allocation2 + $0x78] sm:$0xff]   ;;  %v813_v38 = vld.sshfl [vmem:[%s1222_s1] sm:$0x11 pattern:$0x75316420] }
  0x1d   :  { %v998_v31 = vld [vmem:[%s1224_s3 + $0x30] sm:$0xff]   ;;  %v1002_v36 = vld [vmem:[%s1224_s3 + $0x38] sm:$0xff]   ;;  %v36_v39 = vld [vmem:[%s1221_s0] sm:$0x3f]  ;;  %v174_v40 = vcombine.high %v813_v38, %v813_v38  ;;  %v181_v44 = vrot.slane %v813_v38, %v1177_v35  ;;  %s1089_s3 = smov [#allocation5]  }
  0x1e   :  { %884 = vmatpush3.bf16.msra.mxu0 %v982_v10  ;;  %v999_v32 = vld [vmem:[#allocation2 + $0x30] sm:$0xff]   ;;  %v1003_v37 = vld [vmem:[#allocation2 + $0x38] sm:$0xff]   ;;  %v328_v41 = vcombine.high %v36_v39, %v36_v39  ;;  %v335_v42 = vrot.slane %v36_v39, %v1177_v35  ;;  %v1005_v43 = vld [vmem:[#allocation2 + $0xc0] sm:$0xff]   ;;  %s804_s16 = sshll.u32 %s1089_s3, 4  ;;  %s805_s16 = int_to_ptr.vmem [resolvable:$true] %s804_s16 }
  0x1f   :  { %906 = vmatpush3.bf16.msra.mxu1 %v983_v11  ;;  %885 = vmatprep.subr.bf16.mxu0 %v984_v12  ;;  %v1006_v45 = vld [vmem:[#allocation2 + $0x140] sm:$0xff]   ;;  %v188_v46 = vrot.slane %v174_v40, %v1177_v35  ;;  %v1009_v53 = vld [vmem:[#allocation2 + $0xc8] sm:$0xff]   ;;  %v1013_v60 = vld [vmem:[#allocation2 + $0xd0] sm:$0xff]   ;;  %s1059_s17 = scalar_lea.vmem %s805_s16, 32  ;;  %p1064_p9 = scmp.lt.s32.totalorder %s805_s16, %s805_s16 }
  0x20   :  { %907 = vmatprep.subr.bf16.mxu1 %v985_v13  ;;  %v343_v47 = vcombine.high %v335_v42, %v335_v42  ;;  %v1007_v48 = vld [vmem:[#allocation2 + $0x80] sm:$0xff]   ;;  %v1192_v49 = vrot.slane %v328_v41, %v1177_v35  ;;  %v1195_v50 = vrot.slane %v335_v42, %v1177_v35  ;;  %v1010_v55 = vld [vmem:[#allocation2 + $0x148] sm:$0xff]   ;;  %v1014_v61 = vld [vmem:[#allocation2 + $0x150] sm:$0xff]   ;;  %p1060_p8 = scmp.ne.s32.totalorder %s805_s16, %s1059_s17  ;;  %p1065_p10 = scmp.lt.s32.totalorder %s1059_s17, %s1059_s17 }
  0x21   :  { %v1008_v51 = vld [vmem:[#allocation2 + $0x100] sm:$0xff]   ;;  %319 = vmatprep.mubr.bf16.mxu0 %v188_v46  ;;  %v1011_v57 = vld [vmem:[#allocation2 + $0x88] sm:$0xff]   ;;  %v1015_v62 = vld [vmem:[#allocation2 + $0x90] sm:$0xff]  }
  0x22   :  { %886 = vmatpush3.bf16.msra.mxu0 %v986_v14  ;;  %v365_v52 = vrot.slane %v343_v47, %v1177_v35  ;;  %v344_v54 = vcombine.high %v1192_v49, %v1192_v49  ;;  %v1012_v59 = vld [vmem:[#allocation2 + $0x108] sm:$0xff]   ;;  %v1016_v63 = vld [vmem:[#allocation2 + $0x110] sm:$0xff]   ;;  %v1017_v0 = vld [vmem:[#allocation2 + $0xd8] sm:$0xff]   ;;  %p1066_p11 = por %p1065_p10, %p1064_p9 }
  0x23   :  { %908 = vmatpush3.bf16.msra.mxu1 %v987_v15  ;;  %887 = vmatprep.subr.bf16.mxu0 %v988_v16  ;;  %v1018_v1 = vld [vmem:[#allocation2 + $0x158] sm:$0xff]   ;;  %v1021_v4 = vld [vmem:[#allocation2 + $0xe0] sm:$0xff]   ;;  %v1025_v8 = vld [vmem:[#allocation2 + $0xe8] sm:$0xff]  }
  0x24   :  { %909 = vmatprep.subr.bf16.mxu1 %v989_v17  ;;  %v374_v56 = vcombine.high %v365_v52, %v365_v52  ;;  %701 = vmatprep.mubr.bf16.mxu1 %v365_v52  ;;  %v372_v58 = vrot.slane %v344_v54, %v1177_v35  ;;  %v1019_v2 = vld [vmem:[#allocation2 + $0x98] sm:$0xff]   ;;  %v1022_v5 = vld [vmem:[#allocation2 + $0x160] sm:$0xff]   ;;  %v1026_v9 = vld [vmem:[#allocation2 + $0x168] sm:$0xff]   ;;  %p1067_p12 = pnand %p1066_p11, %p1060_p8 }
  0x25   :  { %v1020_v3 = vld [vmem:[#allocation2 + $0x118] sm:$0xff]   ;;  %v1023_v6 = vld [vmem:[#allocation2 + $0xa0] sm:$0xff]   ;;  %v1027_v10 = vld [vmem:[#allocation2 + $0xa8] sm:$0xff]  }
  0x26   :  { %888 = vmatpush3.bf16.msra.mxu0 %v990_v18  ;;  %v1024_v7 = vld [vmem:[#allocation2 + $0x120] sm:$0xff]   ;;  %v1028_v11 = vld [vmem:[#allocation2 + $0x128] sm:$0xff]   ;;  %v1029_v12 = vld [vmem:[#allocation2 + $0xf0] sm:$0xff]  }
  0x27   :  { %910 = vmatpush3.bf16.msra.mxu1 %v991_v19  ;;  %889 = vmatprep.subr.bf16.mxu0 %v992_v20  ;;  %v1030_v13 = vld [vmem:[#allocation2 + $0x170] sm:$0xff]   ;;  %v1033_v16 = vld [vmem:[#allocation2 + $0xf8] sm:$0xff]   ;;  %v373_v20 = vcombine.high %v1195_v50, %v1195_v50 }
  0x28   :  { %911 = vmatprep.subr.bf16.mxu1 %v993_v21  ;;  %v1031_v14 = vld [vmem:[#allocation2 + $0xb0] sm:$0xff]   ;;  %v1034_v17 = vld [vmem:[#allocation2 + $0x178] sm:$0xff]   ;;  %v358_v21 = vrot.slane %v1192_v49, %v1177_v35 }
  0x29   :  { %v1032_v15 = vld [vmem:[#allocation2 + $0x130] sm:$0xff]   ;;  %v1035_v18 = vld [vmem:[#allocation2 + $0xb8] sm:$0xff]  }
  0x2a   :  { %890 = vmatpush3.bf16.msra.mxu0 %v994_v25  ;;  %v1036_v19 = vld [vmem:[#allocation2 + $0x138] sm:$0xff]  }
  0x2b   :  { %912 = vmatpush3.bf16.msra.mxu1 %v995_v26  ;;  %891 = vmatprep.subr.bf16.mxu0 %v996_v27 }
  0x2c   :  { %913 = vmatprep.subr.bf16.mxu1 %v997_v28 }
  0x2e   :  { %892 = vmatpush3.bf16.msra.mxu0 %v998_v31 }
  0x2f   :  { %914 = vmatpush3.bf16.msra.mxu1 %v999_v32  ;;  %893 = vmatprep.subr.bf16.mxu0 %v1000_v33 }
  0x30   :  { %915 = vmatprep.subr.bf16.mxu1 %v1001_v34 }
  0x32   :  { %894 = vmatpush3.bf16.msra.mxu0 %v1002_v36 }
  0x33   :  { %916 = vmatpush3.bf16.msra.mxu1 %v1003_v37  ;;  %923 = vmatprep.subr.bf16.mxu0 %v1005_v43 }
  0x34   :  { %945 = vmatprep.subr.bf16.mxu1 %v1006_v45 }
  0x35   :  { %320 = vmatmul.mubr.bf16.vlgmr.msra.gmra.mrb[0].mxu0 %v181_v44  ;;  %v878_v44 = vld [vmem:[%s1225_s4] ss:$0 sm:$0xff] }
  0x36   :  { %924 = vmatpush3.bf16.msra.mxu0 %v1007_v48  ;;  %702 = vmatmul.mubr.bf16.vlgmr.msra.gmra.mrb[0].mxu1 %v1195_v50 }
  0x37   :  { %925 = vmatprep.subr.bf16.mxu0 %v1009_v53  ;;  %946 = vmatpush3.bf16.msra.mxu1 %v1008_v51 }
  0x38   :  { %741 = vmatprep.mubr.bf16.mxu0 %v374_v56  ;;  %947 = vmatprep.subr.bf16.mxu1 %v1010_v55 }
  0x39   :  { %781 = vmatprep.mubr.bf16.mxu1 %v372_v58 }
  0x3a   :  { %926 = vmatpush3.bf16.msra.mxu0 %v1011_v57 }
  0x3b   :  { %927 = vmatprep.subr.bf16.mxu0 %v1013_v60  ;;  %948 = vmatpush3.bf16.msra.mxu1 %v1012_v59 }
  0x3c   :  { %949 = vmatprep.subr.bf16.mxu1 %v1014_v61 }
  0x3e   :  { %928 = vmatpush3.bf16.msra.mxu0 %v1015_v62 }
  0x3f   :  { %929 = vmatprep.subr.bf16.mxu0 %v1017_v0  ;;  %950 = vmatpush3.bf16.msra.mxu1 %v1016_v63 }
  0x40   :  { %951 = vmatprep.subr.bf16.mxu1 %v1018_v1 }
  0x42   :  { %930 = vmatpush3.bf16.msra.mxu0 %v1019_v2 }
  0x43   :  { %931 = vmatprep.subr.bf16.mxu0 %v1021_v4  ;;  %952 = vmatpush3.bf16.msra.mxu1 %v1020_v3 }
  0x44   :  { %953 = vmatprep.subr.bf16.mxu1 %v1022_v5 }
  0x46   :  { %932 = vmatpush3.bf16.msra.mxu0 %v1023_v6 }
  0x47   :  { %933 = vmatprep.subr.bf16.mxu0 %v1025_v8  ;;  %954 = vmatpush3.bf16.msra.mxu1 %v1024_v7 }
  0x48   :  { %955 = vmatprep.subr.bf16.mxu1 %v1026_v9 }
  0x4a   :  { %934 = vmatpush3.bf16.msra.mxu0 %v1027_v10 }
  0x4b   :  { %935 = vmatprep.subr.bf16.mxu0 %v1029_v12  ;;  %956 = vmatpush3.bf16.msra.mxu1 %v1028_v11 }
  0x4c   :  { %957 = vmatprep.subr.bf16.mxu1 %v1030_v13 }
  0x4e   :  { %936 = vmatpush3.bf16.msra.mxu0 %v1031_v14 }
  0x4f   :  { %937 = vmatprep.subr.bf16.mxu0 %v1033_v16  ;;  %958 = vmatpush3.bf16.msra.mxu1 %v1032_v15 }
  0x50   :  { %959 = vmatprep.subr.bf16.mxu1 %v1034_v17 }
  0x52   :  { %938 = vmatpush3.bf16.msra.mxu0 %v1035_v18 }
  0x53   :  { %960 = vmatpush3.bf16.msra.mxu1 %v1036_v19 }
  0x55   :  { %742 = vmatmul.mubr.bf16.vlgmr.msra.gmra.mrb[4].mxu0 %v373_v20 }
  0x56   :  { %782 = vmatmul.mubr.bf16.vlgmr.msra.gmra.mrb[4].mxu1 %v358_v21 }
 0x108   :  { %v895_v22 = vpop.f32.mrb[0].mxu0 }
 0x109   :  { %v896_v23 = vpop.f32.mrb[1].mxu0  ;;  %v917_v24 = vpop.f32.mrb[0].mxu1 }
 0x10a   :  { %v897_v25 = vadd.f32 %v896_v23, %v895_v22  ;;  %v898_v26 = vpop.f32.mrb[2].mxu0  ;;  %v918_v27 = vpop.f32.mrb[1].mxu1 }
 0x10b   :  { %v899_v28 = vpop.f32.mrb[3].mxu0  ;;  %v919_v29 = vadd.f32 %v918_v27, %v917_v24  ;;  %v920_v30 = vpop.f32.mrb[2].mxu1 }
 0x10c   :  { %v921_v31 = vpop.f32.mrb[3].mxu1 }
 0x10d   :  { %v704_v32 = vadd.f32 %v919_v29, %v897_v25 }
 0x128   :  { %v939_v33 = vpop.f32.mrb[4].mxu0 }
 0x129   :  { %v940_v34 = vpop.f32.mrb[5].mxu0  ;;  %v961_v36 = vpop.f32.mrb[4].mxu1 }
 0x12a   :  { %v941_v37 = vadd.f32 %v940_v34, %v939_v33  ;;  %v942_v38 = vpop.f32.mrb[6].mxu0  ;;  %v962_v35 = vpop.f32.mrb[5].mxu1 }
 0x12b   :  { %v943_v39 = vpop.f32.mrb[7].mxu0  ;;  %v963_v41 = vadd.f32 %v962_v35, %v961_v36  ;;  %v964_v42 = vpop.f32.mrb[6].mxu1 }
 0x12c   :  { %v744_v40 = vadd.f32 %v941_v37, %v704_v32  ;;  %v965_v43 = vpop.f32.mrb[7].mxu1 }
 0x12e   :  { %v784_v45 = vadd.f32 %v963_v41, %v744_v40 }
 0x130   :  { %v796_v46 = vadd.f32 %v878_v44, %v784_v45 }
 0x132   :  { %797 = vst [vmem:[#allocation5] sm:$0x3] %v796_v46 }
 0x133   :  { %1070 = shalt.err (!%p1067_p12)
}
 0x134   :  { %s1071_s20 = scalar_lea.hbm %s1226_s5, 32 }
 0x135   :  { %p1072_p13 = scmp.ne.s32.totalorder %s1226_s5, %s1071_s20  ;;  %p1075_p0 = scmp.lt.u32.totalorder %s1071_s20, %s1226_s5 }
 0x137   :  { %p1077_p1 = pnand %p1075_p0, %p1072_p13 }
 0x139   :  { %1080 = shalt.err (!%p1077_p1)
}
 0x13a   :  { %807 = dma.vmem_to_hbm [thread:$0]  %s805_s16, 32, %s1226_s5, [#allocation4]  }
 0x13b   :  { %1083 = dma.done.wait [#allocation4], 32  }
 0x13c   :  { %1084 = vsyncadd [#allocation4], 4294967264 }
 0x13d   :  { %811 = vsyncpa [#allocation3], 1 }
 0x13e   :  { %812 = vsyncpa [#allocation4], 1 }

</bundles_post_ra>
